<compile_context>
chip_gen: v7x
topology: tpu7x:2x2x1
jax: 0.10.0
libtpu: 0.0.40
codegen_flags: <defaults>
</compile_context>

<pallas_src>
import functools

import jax
import jax.numpy as jnp
from jax import lax
from jax.experimental import pallas as pl
from jax.experimental.pallas import tpu as pltpu

_EPS = 1e-8      # nn.CosineSimilarity default eps
_LANES = 128     # vreg lane width


def _triplet_loss_kernel(a_ref, p_ref, n_ref, r_ref, out_ref, *,
                         margin, block_rows, pack, batch):
    # Block of (packed) embeddings: (TB, W) in the compute dtype (f32 or bf16).
    a = a_ref[...]
    p = p_ref[...]
    n = n_ref[...]
    red = r_ref[...]  # (W, 128) 0/1 reduction matrix (compute dtype)

    # Per-logical-row reductions on the (otherwise idle) MXU: lane j of the
    # result holds the sum over packed row j's D features; dead lanes are 0.
    # Accumulation is f32 via preferred_element_type, so bf16 inputs only pay
    # one extra rounding on the elementwise product.
    def rowsum(x):
        return jnp.dot(x, red, preferred_element_type=jnp.float32)

    ap = rowsum(a * p)   # (TB, 128) f32
    an = rowsum(a * n)
    a2 = rowsum(a * a)
    p2 = rowsum(p * p)
    n2 = rowsum(n * n)

    # cos(x, y) = x.y / max(||x||*||y||, eps)
    #           = x.y * rsqrt(max(||x||^2 * ||y||^2, eps^2))   (rsqrt -> EUP slot)
    eps2 = jnp.float32(_EPS * _EPS)
    cos_pos = ap * lax.rsqrt(jnp.maximum(a2 * p2, eps2))
    cos_neg = an * lax.rsqrt(jnp.maximum(a2 * n2, eps2))
    losses = jnp.maximum(cos_neg - cos_pos + jnp.float32(margin), 0.0)  # (TB,128)

    # Mask dead lanes (j >= pack) and rows past the true batch size; this covers
    # both packing padding and a padded final tile. Applied AFTER the nonlinear
    # math so garbage/zero rows cannot contaminate the sum.
    i_idx = lax.broadcasted_iota(jnp.int32, losses.shape, 0)
    j_idx = lax.broadcasted_iota(jnp.int32, losses.shape, 1)
    orig_row = (pl.program_id(0) * block_rows + i_idx) * pack + j_idx
    valid = (j_idx < pack) & (orig_row < batch)
    losses = jnp.where(valid, losses, 0.0)

    # Per-tile partial sum written as a lane-dense (1, 8, 128) slab; each grid
    # step owns its own output block, so the axis stays "parallel" (megacore).
    out_ref[...] = jnp.broadcast_to(jnp.sum(losses), out_ref.shape).astype(out_ref.dtype)


def _vmem_capacity_bytes():
    try:
        info = pltpu.get_tpu_info()
        cap = getattr(info, "vmem_capacity_bytes", None)
        if cap:
            return int(cap)
    except Exception:
        pass
    return 64 * 1024 * 1024  # conservative fallback (v7x per-core VMEM)


def _pick_tiling(width, itemsize, align):
    """Pick the per-tile row cap and the scoped-VMEM limit, generation-aware."""
    vmem_cap = _vmem_capacity_bytes()
    # 64 MiB scoped limit on 128-MiB chips (v5e/v6e), 32 MiB on 64-MiB (v7x).
    vmem_limit = (64 if vmem_cap >= 128 * 1024 * 1024 else 32) * 1024 * 1024
    # ~Half the scoped limit for the per-row working set:
    #   2 bufs * 3 inputs * width * itemsize    (double-buffered input blocks)
    # + ~6 * width * 4                          (in-kernel products / f32 temps)
    # minus the double-buffered reduction matrix (does not scale with TB).
    budget = vmem_limit // 2 - 2 * width * _LANES * itemsize
    per_row = 6 * width * itemsize + 6 * width * 4
    cap = budget // per_row if budget > 0 else align
    cap = max(align, (cap // align) * align)
    return cap, vmem_limit


def triplet_loss(anchor, positive, negative, margin=2.0, average=True,
                 block_rows=None):
    """Pallas-backed cosine triplet loss. Returns a float32 scalar."""
    assert anchor.shape == positive.shape == negative.shape
    assert anchor.ndim == 2, "expected (B, D) embeddings"
    B, D = anchor.shape

    # Keep f32/bf16 as-is (bf16 halves HBM traffic; the MXU dot accumulates in
    # f32); any other dtype is cast to f32 up front.
    if anchor.dtype == jnp.float32 or anchor.dtype == jnp.bfloat16:
        compute_dtype = anchor.dtype
    else:
        compute_dtype = jnp.dtype(jnp.float32)
        anchor = anchor.astype(compute_dtype)
        positive = positive.astype(compute_dtype)
        negative = negative.astype(compute_dtype)
    itemsize = jnp.dtype(compute_dtype).itemsize
    align = {4: 8, 2: 16, 1: 32}.get(itemsize, 8)

    # Lane-dense packing for small embeddings: pack k rows per 128-lane group.
    pack = max(1, _LANES // D) if D < _LANES else 1
    if pack > 1:
        padded_b = ((B + pack - 1) // pack) * pack
        if padded_b != B:
            pad = ((0, padded_b - B), (0, 0))
            anchor = jnp.pad(anchor, pad)
            positive = jnp.pad(positive, pad)
            negative = jnp.pad(negative, pad)
        rows, width = padded_b // pack, pack * D
        anchor = anchor.reshape(rows, width)
        positive = positive.reshape(rows, width)
        negative = negative.reshape(rows, width)
    else:
        rows, width = B, D
    # TODO(synk): for D > 128 with D % 128 != 0 the trailing partial lane group
    # is still padded by the layout; correct but slightly lane-wasteful.

    # 0/1 reduction matrix: column j sums lanes [j*D, (j+1)*D) (features of
    # packed row j); dead columns (j >= pack) are zero and masked in-kernel.
    d_idx = jnp.arange(width, dtype=jnp.int32)[:, None]
    l_idx = jnp.arange(_LANES, dtype=jnp.int32)[None, :]
    red = ((l_idx < pack) & (d_idx // D == l_idx)).astype(compute_dtype)

    cap, vmem_limit = _pick_tiling(width, itemsize, align)
    if block_rows is None:
        tb = min(rows, cap)
        # Split a single-tile job into two tiles when non-trivial so the
        # "parallel" grid axis feeds both v7x TensorCores.
        if tb >= rows and rows >= 2 * align and 3 * rows * width * itemsize > (1 << 20):
            tb = (((rows + 1) // 2) + align - 1) // align * align
    else:
        tb = int(block_rows)
    if tb >= rows:
        tb = rows                        # full-dim block: no alignment needed
    else:
        tb = max(align, (tb // align) * align)
    num_tiles = pl.cdiv(rows, tb)

    kernel = functools.partial(
        _triplet_loss_kernel, margin=float(margin), block_rows=tb,
        pack=pack, batch=B)

    in_spec = pl.BlockSpec((tb, width), lambda i: (i, 0))
    red_spec = pl.BlockSpec((width, _LANES), lambda i: (0, 0))

    cost = pl.CostEstimate(
        flops=int(5 * 2 * rows * width * _LANES + 12 * B * D),
        transcendentals=int(2 * B),
        bytes_accessed=int(3 * rows * width * itemsize
                           + width * _LANES * itemsize
                           + num_tiles * 8 * _LANES * 4),
    )

    partials = pl.pallas_call(
        kernel,
        out_shape=jax.ShapeDtypeStruct((num_tiles, 8, _LANES), jnp.float32),
        grid_spec=pltpu.PrefetchScalarGridSpec(
            num_scalar_prefetch=0,
            grid=(num_tiles,),
            in_specs=[in_spec, in_spec, in_spec, red_spec],
            out_specs=pl.BlockSpec((1, 8, _LANES), lambda i: (i, 0, 0)),
        ),
        compiler_params=pltpu.CompilerParams(
            dimension_semantics=("parallel",),
            vmem_limit_bytes=vmem_limit,
        ),
        cost_estimate=cost,
    )(anchor, positive, negative, red)

    total = jnp.sum(partials[:, 0, 0])
    if average:
        return total / jnp.float32(B)
    return total


def _reference(anchor, positive, negative, margin=2.0, average=True):
    """Pure-JAX reference matching the PyTorch semantics."""
    def cos(x1, x2):
        num = jnp.sum(x1 * x2, axis=1)
        den = jnp.maximum(
            jnp.linalg.norm(x1, axis=1) * jnp.linalg.norm(x2, axis=1), _EPS
        )
        return num / den

    losses = jax.nn.relu(-cos(anchor, positive) + cos(anchor, negative) + margin)
    return jnp.mean(losses) if average else jnp.sum(losses)


if __name__ == "__main__":
    key = jax.random.PRNGKey(0)
    k1, k2, k3 = jax.random.split(key, 3)

    # Case 1: B=20 rows (not a multiple of 8, exercising last-tile masking on
    # the forced multi-tile path), D=128 features (one full lane group).
    B, D = 20, 128
    anchor = jax.random.normal(k1, (B, D), dtype=jnp.float32)
    positive = jax.random.normal(k2, (B, D), dtype=jnp.float32)
    negative = jax.random.normal(k3, (B, D), dtype=jnp.float32)

    got_mean = jax.block_until_ready(
        triplet_loss(anchor, positive, negative, margin=2.0, average=True))
    got_sum = jax.block_until_ready(
        triplet_loss(anchor, positive, negative, margin=2.0, average=False))
    got_mean_t = jax.block_until_ready(
        triplet_loss(anchor, positive, negative, margin=2.0, average=True,
                     block_rows=8))
    got_sum_t = jax.block_until_ready(
        triplet_loss(anchor, positive, negative, margin=2.0, average=False,
                     block_rows=8))

    ref_mean = _reference(anchor, positive, negative, margin=2.0, average=True)
    ref_sum = _reference(anchor, positive, negative, margin=2.0, average=False)

    assert jnp.allclose(got_mean, ref_mean, atol=1e-5, rtol=1e-5), (got_mean, ref_mean)
    assert jnp.allclose(got_sum, ref_sum, atol=1e-5, rtol=1e-5), (got_sum, ref_sum)
    assert jnp.allclose(got_mean_t, ref_mean, atol=1e-5, rtol=1e-5), (got_mean_t, ref_mean)
    assert jnp.allclose(got_sum_t, ref_sum, atol=1e-5, rtol=1e-5), (got_sum_t, ref_sum)

    # Case 2: small embeddings (D=32 < 128) exercising the lane-dense packed
    # path (4 rows per lane group) with packing padding (B=10 -> 12 rows).
    B2, D2 = 10, 32
    a_s = jax.random.normal(k1, (B2, D2), dtype=jnp.float32)
    p_s = jax.random.normal(k2, (B2, D2), dtype=jnp.float32)
    n_s = jax.random.normal(k3, (B2, D2), dtype=jnp.float32)

    got_pack_mean = jax.block_until_ready(
        triplet_loss(a_s, p_s, n_s, margin=2.0, average=True))
    got_pack_sum = jax.block_until_ready(
        triplet_loss(a_s, p_s, n_s, margin=2.0, average=False))
    ref_pack_mean = _reference(a_s, p_s, n_s, margin=2.0, average=True)
    ref_pack_sum = _reference(a_s, p_s, n_s, margin=2.0, average=False)

    assert jnp.allclose(got_pack_mean, ref_pack_mean, atol=1e-5, rtol=1e-5), (
        got_pack_mean, ref_pack_mean)
    assert jnp.allclose(got_pack_sum, ref_pack_sum, atol=1e-5, rtol=1e-5), (
        got_pack_sum, ref_pack_sum)

    print("KERNEL_OK")
</pallas_src>

<mosaic_0001>
module attributes {stable_mosaic.version = 11 : i64} {
  func.func @_triplet_loss_kernel(%arg0: i32, %arg1: memref<20x128xf32, #tpu.memory_space<vmem>>, %arg2: memref<20x128xf32, #tpu.memory_space<vmem>>, %arg3: memref<20x128xf32, #tpu.memory_space<vmem>>, %arg4: memref<128x128xf32, #tpu.memory_space<vmem>>, %arg5: memref<1x8x128xf32, #tpu.memory_space<vmem>>) attributes {dimension_semantics = [#tpu.dimension_semantics<parallel>], iteration_bounds = array<i64: 1>, scalar_prefetch = 0 : i64, scratch_operands = 0 : i64, tpu.core_type = #tpu.core_type<tc>, window_params = [{transform_indices = @transform_0, window_bounds = array<i64: 20, 128>}, {transform_indices = @transform_1, window_bounds = array<i64: 20, 128>}, {transform_indices = @transform_2, window_bounds = array<i64: 20, 128>}, {pipeline_mode = #tpu.pipeline_mode<synchronous>, transform_indices = @transform_3, window_bounds = array<i64: 128, 128>}, {transform_indices = @transform_4, window_bounds = array<i64: 1, 8, 128>}]} {
    %c0 = arith.constant 0 : index
    %c0_0 = arith.constant 0 : index
    %0 = vector.load %arg1[%c0, %c0_0] : memref<20x128xf32, #tpu.memory_space<vmem>>, vector<20x128xf32>
    %c0_1 = arith.constant 0 : index
    %c0_2 = arith.constant 0 : index
    %1 = vector.load %arg2[%c0_1, %c0_2] : memref<20x128xf32, #tpu.memory_space<vmem>>, vector<20x128xf32>
    %c0_3 = arith.constant 0 : index
    %c0_4 = arith.constant 0 : index
    %2 = vector.load %arg3[%c0_3, %c0_4] : memref<20x128xf32, #tpu.memory_space<vmem>>, vector<20x128xf32>
    %c0_5 = arith.constant 0 : index
    %c0_6 = arith.constant 0 : index
    %3 = vector.load %arg4[%c0_5, %c0_6] : memref<128x128xf32, #tpu.memory_space<vmem>>, vector<128x128xf32>
    %4 = arith.mulf %0, %1 : vector<20x128xf32>
    %cst = arith.constant dense<0.000000e+00> : vector<20x128xf32>
    %5 = tpu.matmul %4, %3, %cst {dimension_numbers = #tpu.dot_dimension_numbers<[1], [0], [0], [1], [0, 0, 1, 1], [], []>} : vector<20x128xf32>, vector<128x128xf32>, vector<20x128xf32> -> vector<20x128xf32>
    %6 = arith.mulf %0, %2 : vector<20x128xf32>
    %cst_7 = arith.constant dense<0.000000e+00> : vector<20x128xf32>
    %7 = tpu.matmul %6, %3, %cst_7 {dimension_numbers = #tpu.dot_dimension_numbers<[1], [0], [0], [1], [0, 0, 1, 1], [], []>} : vector<20x128xf32>, vector<128x128xf32>, vector<20x128xf32> -> vector<20x128xf32>
    %8 = arith.mulf %0, %0 : vector<20x128xf32>
    %cst_8 = arith.constant dense<0.000000e+00> : vector<20x128xf32>
    %9 = tpu.matmul %8, %3, %cst_8 {dimension_numbers = #tpu.dot_dimension_numbers<[1], [0], [0], [1], [0, 0, 1, 1], [], []>} : vector<20x128xf32>, vector<128x128xf32>, vector<20x128xf32> -> vector<20x128xf32>
    %10 = arith.mulf %1, %1 : vector<20x128xf32>
    %cst_9 = arith.constant dense<0.000000e+00> : vector<20x128xf32>
    %11 = tpu.matmul %10, %3, %cst_9 {dimension_numbers = #tpu.dot_dimension_numbers<[1], [0], [0], [1], [0, 0, 1, 1], [], []>} : vector<20x128xf32>, vector<128x128xf32>, vector<20x128xf32> -> vector<20x128xf32>
    %12 = arith.mulf %2, %2 : vector<20x128xf32>
    %cst_10 = arith.constant dense<0.000000e+00> : vector<20x128xf32>
    %13 = tpu.matmul %12, %3, %cst_10 {dimension_numbers = #tpu.dot_dimension_numbers<[1], [0], [0], [1], [0, 0, 1, 1], [], []>} : vector<20x128xf32>, vector<128x128xf32>, vector<20x128xf32> -> vector<20x128xf32>
    %14 = arith.mulf %9, %11 : vector<20x128xf32>
    %cst_11 = arith.constant 1.000000e-16 : f32
    %15 = vector.broadcast %cst_11 : f32 to vector<20x128xf32>
    %16 = arith.maximumf %14, %15 : vector<20x128xf32>
    %17 = math.rsqrt %16 : vector<20x128xf32>
    %18 = arith.mulf %5, %17 : vector<20x128xf32>
    %19 = arith.mulf %9, %13 : vector<20x128xf32>
    %cst_12 = arith.constant 1.000000e-16 : f32
    %20 = vector.broadcast %cst_12 : f32 to vector<20x128xf32>
    %21 = arith.maximumf %19, %20 : vector<20x128xf32>
    %22 = math.rsqrt %21 : vector<20x128xf32>
    %23 = arith.mulf %7, %22 : vector<20x128xf32>
    %24 = arith.subf %23, %18 : vector<20x128xf32>
    %cst_13 = arith.constant 2.000000e+00 : f32
    %25 = vector.broadcast %cst_13 : f32 to vector<20x128xf32>
    %26 = arith.addf %24, %25 : vector<20x128xf32>
    %cst_14 = arith.constant 0.000000e+00 : f32
    %27 = vector.broadcast %cst_14 : f32 to vector<20x128xf32>
    %28 = arith.maximumf %26, %27 : vector<20x128xf32>
    %29 = tpu.iota {dimensions = array<i32: 0>} : vector<20x128xi32>
    %30 = tpu.iota {dimensions = array<i32: 1>} : vector<20x128xi32>
    %c20_i32 = arith.constant 20 : i32
    %31 = arith.muli %arg0, %c20_i32 : i32
    %32 = vector.broadcast %31 : i32 to vector<20x128xi32>
    %33 = arith.addi %32, %29 : vector<20x128xi32>
    %c1_i32 = arith.constant 1 : i32
    %34 = vector.broadcast %c1_i32 : i32 to vector<20x128xi32>
    %35 = arith.muli %33, %34 : vector<20x128xi32>
    %36 = arith.addi %35, %30 : vector<20x128xi32>
    %c1_i32_15 = arith.constant 1 : i32
    %37 = vector.broadcast %c1_i32_15 : i32 to vector<20x128xi32>
    %38 = arith.cmpi slt, %30, %37 : vector<20x128xi32>
    %c20_i32_16 = arith.constant 20 : i32
    %39 = vector.broadcast %c20_i32_16 : i32 to vector<20x128xi32>
    %40 = arith.cmpi slt, %36, %39 : vector<20x128xi32>
    %41 = arith.andi %38, %40 : vector<20x128xi1>
    %cst_17 = arith.constant 0.000000e+00 : f32
    %42 = vector.broadcast %cst_17 : f32 to vector<20x128xf32>
    %43 = arith.select %41, %28, %42 : vector<20x128xi1>, vector<20x128xf32>
    %44 = vector.shape_cast %43 : vector<20x128xf32> to vector<1x20x128xf32>
    %cst_18 = arith.constant dense<0.000000e+00> : vector<1xf32>
    %45 = vector.multi_reduction <add>, %44, %cst_18 [1, 2] : vector<1x20x128xf32> to vector<1xf32>
    %46 = vector.shape_cast %45 : vector<1xf32> to vector<1x1x1xf32>
    %47 = vector.extract %46[0, 0, 0] : f32 from vector<1x1x1xf32>
    %48 = vector.broadcast %47 : f32 to vector<1x8x128xf32>
    %c0_19 = arith.constant 0 : index
    %c0_20 = arith.constant 0 : index
    %c0_21 = arith.constant 0 : index
    %49 = vector.load %arg5[%c0_19, %c0_20, %c0_21] : memref<1x8x128xf32, #tpu.memory_space<vmem>>, vector<1x8x128xf32>
    tpu.vector_store %arg5[%c0_19, %c0_20, %c0_21], %48 {strides = array<i32>} : memref<1x8x128xf32, #tpu.memory_space<vmem>>, vector<1x8x128xf32>,
    return
  }
  func.func @transform_0(%arg0: i32) -> (i32, i32) {
    %c0_i32 = arith.constant 0 : i32
    %c0_i32_0 = arith.constant 0 : i32
    return %arg0, %c0_i32 : i32, i32
  }
  func.func @transform_1(%arg0: i32) -> (i32, i32) {
    %c0_i32 = arith.constant 0 : i32
    %c0_i32_0 = arith.constant 0 : i32
    return %arg0, %c0_i32 : i32, i32
  }
  func.func @transform_2(%arg0: i32) -> (i32, i32) {
    %c0_i32 = arith.constant 0 : i32
    %c0_i32_0 = arith.constant 0 : i32
    return %arg0, %c0_i32 : i32, i32
  }
  func.func @transform_3(%arg0: i32) -> (i32, i32) {
    %c0_i32 = arith.constant 0 : i32
    %c0_i32_0 = arith.constant 0 : i32
    %c0_i32_1 = arith.constant 0 : i32
    return %c0_i32, %c0_i32_0 : i32, i32
  }
  func.func @transform_4(%arg0: i32) -> (i32, i32, i32) {
    %c0_i32 = arith.constant 0 : i32
    %c0_i32_0 = arith.constant 0 : i32
    %c0_i32_1 = arith.constant 0 : i32
    return %arg0, %c0_i32, %c0_i32_0 : i32, i32, i32
  }
}

</mosaic_0001>

<bundles_post_ra>
// kernel: tpu_custom_call.1
= control target key start
LH: loop header
LB: loop body
LE: loop exit
PB: predicated region body
PF: predicated region fallthrough
CT: control target
= control target key end

     0   :  { %9 = vsyncpa [#allocation3], 0  ;;  %s1467_s0 = inlined_call_operand.hbm [shape: f32[20,128], index: 0, kind: input, shape index: {}]   ;;  %s1468_s1 = inlined_call_operand.hbm [shape: f32[20,128], index: 1, kind: input, shape index: {}]   ;;  %s1469_s2 = inlined_call_operand.hbm [shape: f32[20,128], index: 2, kind: input, shape index: {}]   ;;  %s1470_s3 = inlined_call_operand.hbm [shape: f32[128,128], index: 3, kind: input, shape index: {}]   ;;  %s1471_s4 = inlined_call_operand.hbm [shape: f32[1,8,128], index: 4, kind: output, shape index: {}]  }
   0x1   :  { %10 = vsyncpa [#allocation6], 0 }
   0x2   :  { %11 = vsyncpa [#allocation9], 0 }
   0x3   :  { %12 = vsyncpa [#allocation4], 0  ;;  %s1180_s15 = smov [#allocation5]   ;;  %s1181_s17 = smov [#allocation2]  }
   0x4   :  { %s30_s16 = sshll.u32 %s1180_s15, 4  ;;  %s18_s18 = sshll.u32 %s1181_s17, 4  ;;  %s31_s16 = int_to_ptr.vmem [resolvable:$true] %s30_s16  ;;  %s1215_s18 = int_to_ptr.vmem [resolvable:$true] %s18_s18 }
   0x5   :  { %s1062_s21 = scalar_lea.hbm %s1468_s1, 384 }
   0x6   :  { %p1063_p0 = scmp.ne.s32.totalorder %s1468_s1, %s1062_s21  ;;  %p1066_p1 = scmp.lt.u32.totalorder %s1062_s21, %s1468_s1 }
   0x8   :  { %p1068_p2 = pnand %p1066_p1, %p1063_p0 }
   0xa   :  { %1071 = shalt.err (!%p1068_p2)
}
   0xb   :  { %s1072_s26 = scalar_lea.vmem %s31_s16, 384  ;;  %p1077_p4 = scmp.lt.s32.totalorder %s31_s16, %s31_s16 }
   0xc   :  { %p1073_p3 = scmp.ne.s32.totalorder %s31_s16, %s1072_s26  ;;  %p1078_p5 = scmp.lt.s32.totalorder %s1072_s26, %s1072_s26 }
   0xe   :  { %p1079_p6 = por %p1078_p5, %p1077_p4 }
  0x10   :  { %p1080_p7 = pnand %p1079_p6, %p1073_p3 }
  0x12   :  { %1083 = shalt.err (!%p1080_p7)
}
  0x13   :  { %s1182_s27 = smov 128   ;;  %s1183_s28 = smov 8  }
  0x14   :  { %36 = dma.hbm_to_vmem [thread:$0]  %s1468_s1, 384, %s31_s16, [#allocation6], %s1182_s27, %s1182_s27, %s1183_s28  }
  0x15   :  { %s1084_s7 = scalar_lea.hbm %s1467_s0, 384 }
  0x16   :  { %p1085_p8 = scmp.ne.s32.totalorder %s1467_s0, %s1084_s7  ;;  %p1088_p9 = scmp.lt.u32.totalorder %s1084_s7, %s1467_s0 }
  0x18   :  { %p1090_p10 = pnand %p1088_p9, %p1085_p8 }
  0x1a   :  { %1093 = shalt.err (!%p1090_p10)
}
  0x1b   :  { %s1094_s12 = scalar_lea.vmem %s1215_s18, 384  ;;  %p1099_p12 = scmp.lt.s32.totalorder %s1215_s18, %s1215_s18 }
  0x1c   :  { %p1095_p11 = scmp.ne.s32.totalorder %s1215_s18, %s1094_s12  ;;  %p1100_p13 = scmp.lt.s32.totalorder %s1094_s12, %s1094_s12 }
  0x1e   :  { %p1101_p0 = por %p1100_p13, %p1099_p12 }
  0x20   :  { %p1102_p1 = pnand %p1101_p0, %p1095_p11 }
  0x22   :  { %1105 = shalt.err (!%p1102_p1)
}
  0x23   :  { %24 = dma.hbm_to_vmem [thread:$0]  %s1467_s0, 384, %s1215_s18, [#allocation3], %s1182_s27, %s1182_s27, %s1183_s28  }
  0x24   :  { %s1184_s14 = smov [#allocation7]   ;;  %s1185_s16 = smov [#allocation8]  }
  0x25   :  { %s42_s15 = sshll.u32 %s1184_s14, 4  ;;  %s54_s17 = sshll.u32 %s1185_s16, 4  ;;  %s43_s15 = int_to_ptr.vmem [resolvable:$true] %s42_s15  ;;  %s1252_s17 = int_to_ptr.vmem [resolvable:$true] %s54_s17 }
  0x26   :  { %s1106_s21 = scalar_lea.hbm %s1469_s2, 384 }
  0x27   :  { %p1107_p2 = scmp.ne.s32.totalorder %s1469_s2, %s1106_s21  ;;  %p1110_p3 = scmp.lt.u32.totalorder %s1106_s21, %s1469_s2 }
  0x29   :  { %p1112_p4 = pnand %p1110_p3, %p1107_p2 }
  0x2b   :  { %1115 = shalt.err (!%p1112_p4)
}
  0x2c   :  { %s1116_s0 = scalar_lea.vmem %s43_s15, 384  ;;  %p1121_p6 = scmp.lt.s32.totalorder %s43_s15, %s43_s15 }
  0x2d   :  { %p1117_p5 = scmp.ne.s32.totalorder %s43_s15, %s1116_s0  ;;  %p1122_p7 = scmp.lt.s32.totalorder %s1116_s0, %s1116_s0 }
  0x2f   :  { %p1123_p8 = por %p1122_p7, %p1121_p6 }
  0x31   :  { %p1124_p9 = pnand %p1123_p8, %p1117_p5 }
  0x33   :  { %1127 = shalt.err (!%p1124_p9)
}
  0x34   :  { %48 = dma.hbm_to_vmem [thread:$0]  %s1469_s2, 384, %s43_s15, [#allocation6], %s1182_s27, %s1182_s27, %s1183_s28  }
  0x35   :  { %s1128_s5 = scalar_lea.hbm %s1470_s3, 2048 }
  0x36   :  { %p1129_p10 = scmp.ne.s32.totalorder %s1470_s3, %s1128_s5  ;;  %p1132_p11 = scmp.lt.u32.totalorder %s1128_s5, %s1470_s3 }
  0x38   :  { %p1134_p12 = pnand %p1132_p11, %p1129_p10 }
  0x3a   :  { %1137 = shalt.err (!%p1134_p12)
}
  0x3b   :  { %s1138_s10 = scalar_lea.vmem %s1252_s17, 2048  ;;  %p1143_p0 = scmp.lt.s32.totalorder %s1252_s17, %s1252_s17 }
  0x3c   :  { %p1139_p13 = scmp.ne.s32.totalorder %s1252_s17, %s1138_s10  ;;  %p1144_p1 = scmp.lt.s32.totalorder %s1138_s10, %s1138_s10 }
  0x3e   :  { %p1145_p2 = por %p1144_p1, %p1143_p0 }
  0x40   :  { %p1146_p3 = pnand %p1145_p2, %p1139_p13 }
  0x42   :  { %1149 = shalt.err (!%p1146_p3)
}
  0x43   :  { %60 = dma.hbm_to_vmem [thread:$0]  %s1470_s3, 2048, %s1252_s17, [#allocation9], %s1182_s27, %s1182_s27, %s1183_s28  }
  0x44   :  { %1172 = dma.done.wait [#allocation3], 384  }
  0x45   :  { %1173 = vsyncadd [#allocation3], 4294966912 }
  0x46   :  { %1174 = dma.done.wait [#allocation6], 768  }
  0x47   :  { %1175 = vsyncadd [#allocation6], 4294966528 }
  0x48   :  { %1176 = dma.done.wait [#allocation9], 2048  }
  0x49   :  { %1177 = vsyncadd [#allocation9], 4294965248  ;;  %v1186_v0 = vmov 0.0|0.0   ;;  %vm1187_vm0 = vmmov 0   ;;  %v1188_v1 = vmov 0.0   ;;  %v82_v2 = vld [vmem:[#allocation8] sm:$0xff] }
  0x4a   :  { %902 = vmatprep.subr.bf16.mxu0 %v1186_v0  ;;  %926 = vmatprep.subr.bf16.mxu1 %v1186_v0  ;;  %v83_v3 = vld [vmem:[#allocation8 + $0x8] sm:$0xff]  ;;  %v84_v4 = vld [vmem:[#allocation8 + $0x10] sm:$0xff]  ;;  %v85_v6 = vld [vmem:[#allocation8 + $0x18] sm:$0xff]  ;;  %vm571_vm8 = vcmask 1043456   ;;  %s1189_s3 = smov [#allocation10]  }
  0x4b   :  { %770 = vmatprep.mubr.msk.f32.mxu1 %vm1187_vm0, %v1188_v1  ;;  %729 = vmatprep.mubr.msk.f32.mxu0 %vm1187_vm0, %v1188_v1  ;;  %v1295_v5 = vpack.c.bf16 %v83_v3, %v82_v2  ;;  %v1299_v7 = vpack.c.bf16 %v85_v6, %v84_v4  ;;  %v86_v8 = vld [vmem:[#allocation8 + $0x20] sm:$0xff]  ;;  %v87_v9 = vld [vmem:[#allocation8 + $0x28] sm:$0xff]  ;;  %v88_v11 = vld [vmem:[#allocation8 + $0x30] sm:$0xff]  ;;  %s591_s27 = sshll.u32 %s1189_s3, 4  ;;  %s592_s27 = int_to_ptr.vmem [resolvable:$true] %s591_s27 }
  0x4c   :  { %v1305_v10 = vpack.c.bf16 %v87_v9, %v86_v8  ;;  %v89_v12 = vld [vmem:[#allocation8 + $0x38] sm:$0xff]  ;;  %v90_v14 = vld [vmem:[#allocation8 + $0x40] sm:$0xff]  ;;  %v91_v15 = vld [vmem:[#allocation8 + $0x48] sm:$0xff]  ;;  %s1150_s12 = scalar_lea.vmem %s592_s27, 128  ;;  %p1155_p5 = scmp.lt.s32.totalorder %s592_s27, %s592_s27 }
  0x4d   :  { %904 = vmatpush3.bf16.msra.mxu0 %v1295_v5  ;;  %928 = vmatpush3.bf16.msra.mxu1 %v1295_v5  ;;  %v1311_v13 = vpack.c.bf16 %v89_v12, %v88_v11  ;;  %v1317_v16 = vpack.c.bf16 %v91_v15, %v90_v14  ;;  %v92_v17 = vld [vmem:[#allocation8 + $0x50] sm:$0xff]  ;;  %v93_v18 = vld [vmem:[#allocation8 + $0x58] sm:$0xff]  ;;  %v94_v20 = vld [vmem:[#allocation8 + $0x60] sm:$0xff]  ;;  %p1151_p4 = scmp.ne.s32.totalorder %s592_s27, %s1150_s12  ;;  %p1156_p6 = scmp.lt.s32.totalorder %s1150_s12, %s1150_s12 }
  0x4e   :  { %905 = vmatprep.subr.bf16.mxu0 %v1186_v0  ;;  %929 = vmatprep.subr.bf16.mxu1 %v1186_v0  ;;  %v1323_v19 = vpack.c.bf16 %v93_v18, %v92_v17  ;;  %v95_v21 = vld [vmem:[#allocation8 + $0x68] sm:$0xff]  ;;  %v96_v23 = vld [vmem:[#allocation8 + $0x70] sm:$0xff]  ;;  %v97_v24 = vld [vmem:[#allocation8 + $0x78] sm:$0xff] }
  0x4f   :  { %v1329_v22 = vpack.c.bf16 %v95_v21, %v94_v20  ;;  %v1335_v25 = vpack.c.bf16 %v97_v24, %v96_v23  ;;  %v73_v26 = vld [vmem:[#allocation2] sm:$0xff]  ;;  %v1337_v27 = vld [vmem:[#allocation7] sm:$0xff]  ;;  %v76_v28 = vld [vmem:[#allocation5] sm:$0xff]  ;;  %p1157_p7 = por %p1156_p6, %p1155_p5 }
  0x50   :  { %v181_v29 = vmul.f32 %v1337_v27, %v73_v26  ;;  %v98_v30 = vmul.f32 %v76_v28, %v73_v26  ;;  %v74_v31 = vld [vmem:[#allocation2 + $0x8] sm:$0xff]  ;;  %v77_v32 = vld [vmem:[#allocation5 + $0x8] sm:$0xff]  ;;  %v1344_v33 = vld [vmem:[#allocation7 + $0x8] sm:$0xff]  ;;  %v264_v41 = vmul.f32 %v73_v26, %v73_v26  ;;  %v347_v42 = vmul.f32 %v76_v28, %v76_v28 }
  0x51   :  { %907 = vmatpush3.bf16.msra.mxu0 %v1299_v7  ;;  %931 = vmatpush3.bf16.msra.mxu1 %v1299_v7  ;;  %v99_v34 = vmul.f32 %v77_v32, %v74_v31  ;;  %v182_v35 = vmul.f32 %v1344_v33, %v74_v31  ;;  %v75_v36 = vld [vmem:[#allocation2 + $0x10] sm:$0xf]  ;;  %v78_v37 = vld [vmem:[#allocation5 + $0x10] sm:$0xf]  ;;  %v1351_v38 = vld [vmem:[#allocation7 + $0x10] sm:$0xf]  ;;  %v265_v43 = vmul.f32 %v74_v31, %v74_v31  ;;  %p1158_p8 = pnand %p1157_p7, %p1151_p4 }
  0x52   :  { %908 = vmatprep.subr.bf16.mxu0 %v1186_v0  ;;  %932 = vmatprep.subr.bf16.mxu1 %v1186_v0  ;;  %v100_v39 = vmul.f32 %v78_v37, %v75_v36  ;;  %v183_v40 = vmul.f32 %v1351_v38, %v75_v36  ;;  %v348_v44 = vmul.f32 %v77_v32, %v77_v32 }
  0x53   :  { %v266_v45 = vmul.f32 %v75_v36, %v75_v36  ;;  %v349_v46 = vmul.f32 %v78_v37, %v78_v37  ;;  %v430_v47 = vmul.f32 %v1337_v27, %v1337_v27  ;;  %v431_v48 = vmul.f32 %v1344_v33, %v1344_v33 }
  0x54   :  { %v432_v49 = vmul.f32 %v1351_v38, %v1351_v38 }
  0x55   :  { %910 = vmatpush3.bf16.msra.mxu0 %v1305_v10  ;;  %934 = vmatpush3.bf16.msra.mxu1 %v1305_v10 }
  0x56   :  { %911 = vmatprep.subr.bf16.mxu0 %v1186_v0  ;;  %935 = vmatprep.subr.bf16.mxu1 %v1186_v0 }
  0x59   :  { %913 = vmatpush3.bf16.msra.mxu0 %v1311_v13  ;;  %937 = vmatpush3.bf16.msra.mxu1 %v1311_v13 }
  0x5a   :  { %914 = vmatprep.subr.bf16.mxu0 %v1186_v0  ;;  %938 = vmatprep.subr.bf16.mxu1 %v1186_v0 }
  0x5d   :  { %916 = vmatpush3.bf16.msra.mxu0 %v1317_v16  ;;  %940 = vmatpush3.bf16.msra.mxu1 %v1317_v16 }
  0x5e   :  { %917 = vmatprep.subr.bf16.mxu0 %v1186_v0  ;;  %941 = vmatprep.subr.bf16.mxu1 %v1186_v0 }
  0x61   :  { %919 = vmatpush3.bf16.msra.mxu0 %v1323_v19  ;;  %943 = vmatpush3.bf16.msra.mxu1 %v1323_v19 }
  0x62   :  { %920 = vmatprep.subr.bf16.mxu0 %v1186_v0  ;;  %944 = vmatprep.subr.bf16.mxu1 %v1186_v0 }
  0x65   :  { %922 = vmatpush3.bf16.msra.mxu0 %v1329_v22  ;;  %946 = vmatpush3.bf16.msra.mxu1 %v1329_v22 }
  0x66   :  { %923 = vmatprep.subr.bf16.mxu0 %v1186_v0  ;;  %947 = vmatprep.subr.bf16.mxu1 %v1186_v0 }
  0x69   :  { %925 = vmatpush3.bf16.msra.mxu0 %v1335_v25  ;;  %949 = vmatpush3.bf16.msra.mxu1 %v1335_v25 }
  0x6a   :  { %950 = vmatprep.subr.bf16.mxu0 %v1186_v0  ;;  %974 = vmatprep.subr.bf16.mxu1 %v1186_v0 }
  0x6c   :  { %771 = vmatmul.mubr.f32.vlgmr.msra.gmra.mrb[0].mxu1 %v181_v29  ;;  %730 = vmatmul.mubr.f32.vlgmr.msra.gmra.mrb[0].mxu0 %v98_v30  ;;  %v546_v30 = vlaneseq }
  0x6d   :  { %952 = vmatpush3.bf16.msra.mxu0 %v1295_v5  ;;  %976 = vmatpush3.bf16.msra.mxu1 %v1295_v5 }
  0x6e   :  { %953 = vmatprep.subr.bf16.mxu0 %v1186_v0  ;;  %977 = vmatprep.subr.bf16.mxu1 %v1186_v0  ;;  %v551_v36 = vand.u32 127, %v546_v30 }
  0x6f   :  { %732 = vmatprep.mubr.msk.f32.mxu0 %vm1187_vm0, %v1188_v1  ;;  %773 = vmatprep.mubr.msk.f32.mxu1 %vm1187_vm0, %v1188_v1 }
  0x70   :  { %733 = vmatmul.mubr.f32.gmra.mrb[2].mxu0 %v99_v34  ;;  %774 = vmatmul.mubr.f32.gmra.mrb[2].mxu1 %v182_v35  ;;  %v547_v35 = vshrl.u32 %v546_v30, 7  ;;  %vm560_vm1 = vcmp.lt.s32.totalorder %v551_v36, 1 }
  0x71   :  { %955 = vmatpush3.bf16.msra.mxu0 %v1299_v7  ;;  %979 = vmatpush3.bf16.msra.mxu1 %v1299_v7 }
  0x72   :  { %956 = vmatprep.subr.bf16.mxu0 %v1186_v0  ;;  %980 = vmatprep.subr.bf16.mxu1 %v1186_v0  ;;  %v548_v37 = vadd.s32 8, %v547_v35  ;;  %v549_v38 = vadd.s32 16, %v547_v35 }
  0x73   :  { %735 = vmatprep.mubr.msk.f32.mxu0 %vm1187_vm0, %v1188_v1  ;;  %776 = vmatprep.mubr.msk.f32.mxu1 %vm1187_vm0, %v1188_v1 }
  0x74   :  { %736 = vmatmul.mubr.f32.gmra.mrb[4].mxu0 %v100_v39  ;;  %777 = vmatmul.mubr.f32.gmra.mrb[4].mxu1 %v183_v40  ;;  %v557_v39 = vadd.s32 %v551_v36, %v547_v35 }
  0x75   :  { %958 = vmatpush3.bf16.msra.mxu0 %v1305_v10  ;;  %982 = vmatpush3.bf16.msra.mxu1 %v1305_v10 }
  0x76   :  { %959 = vmatprep.subr.bf16.mxu0 %v1186_v0  ;;  %983 = vmatprep.subr.bf16.mxu1 %v1186_v0  ;;  %vm561_vm2 = vcmp.lt.s32.totalorder %v557_v39, 20 }
  0x77   :  { %811 = vmatprep.mubr.msk.f32.mxu0 %vm1187_vm0, %v1188_v1  ;;  %852 = vmatprep.mubr.msk.f32.mxu1 %vm1187_vm0, %v1188_v1  ;;  %vm564_vm4 = vmand %vm560_vm1, %vm561_vm2 }
  0x79   :  { %961 = vmatpush3.bf16.msra.mxu0 %v1311_v13  ;;  %985 = vmatpush3.bf16.msra.mxu1 %v1311_v13 }
  0x7a   :  { %962 = vmatprep.subr.bf16.mxu0 %v1186_v0  ;;  %986 = vmatprep.subr.bf16.mxu1 %v1186_v0 }
  0x7d   :  { %964 = vmatpush3.bf16.msra.mxu0 %v1317_v16  ;;  %988 = vmatpush3.bf16.msra.mxu1 %v1317_v16 }
  0x7e   :  { %965 = vmatprep.subr.bf16.mxu0 %v1186_v0  ;;  %989 = vmatprep.subr.bf16.mxu1 %v1186_v0 }
  0x81   :  { %967 = vmatpush3.bf16.msra.mxu0 %v1323_v19  ;;  %991 = vmatpush3.bf16.msra.mxu1 %v1323_v19 }
  0x82   :  { %968 = vmatprep.subr.bf16.mxu0 %v1186_v0  ;;  %992 = vmatprep.subr.bf16.mxu1 %v1186_v0 }
  0x85   :  { %970 = vmatpush3.bf16.msra.mxu0 %v1329_v22  ;;  %994 = vmatpush3.bf16.msra.mxu1 %v1329_v22 }
  0x86   :  { %971 = vmatprep.subr.bf16.mxu0 %v1186_v0  ;;  %995 = vmatprep.subr.bf16.mxu1 %v1186_v0 }
  0x89   :  { %973 = vmatpush3.bf16.msra.mxu0 %v1335_v25  ;;  %997 = vmatpush3.bf16.msra.mxu1 %v1335_v25 }
  0x8a   :  { %998 = vmatprep.subr.bf16.mxu0 %v1186_v0  ;;  %1022 = vmatprep.subr.bf16.mxu1 %v1186_v0 }
  0x8c   :  { %812 = vmatmul.mubr.f32.vlgmr.msra.gmra.mrb[6].mxu0 %v264_v41  ;;  %853 = vmatmul.mubr.f32.vlgmr.msra.gmra.mrb[6].mxu1 %v347_v42  ;;  %v558_v41 = vadd.s32 %v551_v36, %v548_v37 }
  0x8d   :  { %1000 = vmatpush3.bf16.msra.mxu0 %v1295_v5  ;;  %1030 = vmatpush3.bf16.msra.mxu1 %v1295_v5 }
  0x8e   :  { %814 = vmatprep.mubr.msk.f32.mxu0 %vm1187_vm0, %v1188_v1  ;;  %855 = vmatprep.mubr.msk.f32.mxu1 %vm1187_vm0, %v1188_v1  ;;  %vm562_vm3 = vcmp.lt.s32.totalorder %v558_v41, 20 }
  0x8f   :  { %1001 = vmatprep.subr.bf16.mxu0 %v1186_v0  ;;  %1023 = vmatprep.subr.bf16.mxu1 %v1186_v0  ;;  %vm565_vm6 = vmand %vm560_vm1, %vm562_vm3 }
  0x90   :  { %815 = vmatmul.mubr.f32.gmra.mrb[8].mxu0 %v265_v43  ;;  %856 = vmatmul.mubr.f32.gmra.mrb[8].mxu1 %v348_v44 }
  0x91   :  { %1003 = vmatpush3.bf16.msra.mxu0 %v1299_v7  ;;  %1031 = vmatpush3.bf16.msra.mxu1 %v1299_v7 }
  0x92   :  { %817 = vmatprep.mubr.msk.f32.mxu0 %vm1187_vm0, %v1188_v1  ;;  %858 = vmatprep.mubr.msk.f32.mxu1 %vm1187_vm0, %v1188_v1 }
  0x93   :  { %1004 = vmatprep.subr.bf16.mxu0 %v1186_v0  ;;  %1024 = vmatprep.subr.bf16.mxu1 %v1186_v0 }
  0x94   :  { %818 = vmatmul.mubr.f32.gmra.mrb[10].mxu0 %v266_v45  ;;  %859 = vmatmul.mubr.f32.gmra.mrb[10].mxu1 %v349_v46  ;;  %v559_v46 = vadd.s32 %v551_v36, %v549_v38 }
  0x95   :  { %1006 = vmatpush3.bf16.msra.mxu0 %v1305_v10  ;;  %1032 = vmatpush3.bf16.msra.mxu1 %v1305_v10 }
  0x96   :  { %1007 = vmatprep.subr.bf16.mxu0 %v1186_v0  ;;  %1025 = vmatprep.subr.bf16.mxu1 %v1186_v0  ;;  %vm563_vm5 = vcmp.lt.s32.totalorder %v559_v46, 20 }
  0x97   :  { %893 = vmatprep.mubr.msk.f32.mxu0 %vm1187_vm0, %v1188_v1  ;;  %896 = vmatprep.mubr.msk.f32.mxu1 %vm1187_vm0, %v1188_v1  ;;  %vm566_vm7 = vmand %vm560_vm1, %vm563_vm5 }
  0x99   :  { %1009 = vmatpush3.bf16.msra.mxu0 %v1311_v13  ;;  %1033 = vmatpush3.bf16.msra.mxu1 %v1311_v13 }
  0x9a   :  { %1010 = vmatprep.subr.bf16.mxu0 %v1186_v0  ;;  %1026 = vmatprep.subr.bf16.mxu1 %v1186_v0 }
  0x9d   :  { %1012 = vmatpush3.bf16.msra.mxu0 %v1317_v16  ;;  %1034 = vmatpush3.bf16.msra.mxu1 %v1317_v16 }
  0x9e   :  { %1013 = vmatprep.subr.bf16.mxu0 %v1186_v0  ;;  %1027 = vmatprep.subr.bf16.mxu1 %v1186_v0 }
  0xa1   :  { %1015 = vmatpush3.bf16.msra.mxu0 %v1323_v19  ;;  %1035 = vmatpush3.bf16.msra.mxu1 %v1323_v19 }
  0xa2   :  { %1016 = vmatprep.subr.bf16.mxu0 %v1186_v0  ;;  %1028 = vmatprep.subr.bf16.mxu1 %v1186_v0 }
  0xa5   :  { %1018 = vmatpush3.bf16.msra.mxu0 %v1329_v22  ;;  %1036 = vmatpush3.bf16.msra.mxu1 %v1329_v22 }
  0xa6   :  { %1019 = vmatprep.subr.bf16.mxu0 %v1186_v0  ;;  %1029 = vmatprep.subr.bf16.mxu1 %v1186_v0 }
  0xa9   :  { %1021 = vmatpush3.bf16.msra.mxu0 %v1335_v25  ;;  %1037 = vmatpush3.bf16.msra.mxu1 %v1335_v25 }
  0xac   :  { %894 = vmatmul.mubr.f32.vlgmr.msra.gmra.mrb[12].mxu0 %v430_v47  ;;  %897 = vmatmul.mubr.f32.vlgmr.msra.gmra.mrb[12].mxu1 %v431_v48 }
  0xad   :  { %899 = vmatprep.mubr.msk.f32.mxu1 %vm1187_vm0, %v1188_v1 }
  0xb0   :  { %900 = vmatmul.mubr.f32.gmra.mrb[14].mxu1 %v432_v49 }
 0x13f   :  { %v1446_v50 = vpop.f32.mrb[0].mxu1  ;;  %v167_v51 = vpop.f32.mrb[0].mxu0 }
 0x140   :  { %v772_v52 = vpop.f32.mrb[1].mxu1  ;;  %v731_v53 = vpop.f32.mrb[1].mxu0 }
 0x143   :  { %v255_v54 = vpop.f32.mrb[2].mxu1  ;;  %v172_v55 = vpop.f32.mrb[2].mxu0 }
 0x144   :  { %v775_v56 = vpop.f32.mrb[3].mxu1  ;;  %v734_v57 = vpop.f32.mrb[3].mxu0 }
 0x147   :  { %v1448_v58 = vpop.f32.mrb[4].mxu1  ;;  %v177_v59 = vpop.f32.mrb[4].mxu0 }
 0x148   :  { %v778_v60 = vpop.f32.mrb[5].mxu1  ;;  %v737_v61 = vpop.f32.mrb[5].mxu0 }
 0x15f   :  { %v333_v62 = vpop.f32.mrb[6].mxu0  ;;  %v416_v63 = vpop.f32.mrb[6].mxu1 }
 0x160   :  { %v513_v0 = vmul.f32 %v416_v63, %v333_v62  ;;  %v854_v2 = vpop.f32.mrb[7].mxu1  ;;  %v813_v1 = vpop.f32.mrb[7].mxu0 }
 0x162   :  { %v516_v3 = vmax.f32 %v513_v0, 1e-16 }
 0x163   :  { %v338_v4 = vpop.f32.mrb[8].mxu0  ;;  %v421_v5 = vpop.f32.mrb[8].mxu1 }
 0x164   :  { %1050 = vrsqrt.f32 %v516_v3  ;;  %v514_v6 = vmul.f32 %v421_v5, %v338_v4  ;;  %v816_v7 = vpop.f32.mrb[9].mxu0  ;;  %v857_v8 = vpop.f32.mrb[9].mxu1 }
 0x166   :  { %v517_v9 = vmax.f32 %v514_v6, 1e-16 }
 0x167   :  { %v343_v10 = vpop.f32.mrb[10].mxu0  ;;  %v426_v11 = vpop.f32.mrb[10].mxu1 }
 0x168   :  { %1052 = vrsqrt.f32 %v517_v9  ;;  %v515_v12 = vmul.f32 %v426_v11, %v343_v10  ;;  %v860_v13 = vpop.f32.mrb[11].mxu1  ;;  %v819_v14 = vpop.f32.mrb[11].mxu0 }
 0x16a   :  { %v518_v15 = vmax.f32 %v515_v12, 1e-16 }
 0x16c   :  { %1054 = vrsqrt.f32 %v518_v15 }
 0x16e   :  { %v1051_v16 = vpop.eup %1050 }
 0x16f   :  { %v522_v17 = vmul.f32 %v1051_v16, %v167_v51 }
 0x172   :  { %v1053_v18 = vpop.eup %1052 }
 0x173   :  { %v523_v19 = vmul.f32 %v1053_v18, %v172_v55 }
 0x176   :  { %v1055_v20 = vpop.eup %1054 }
 0x177   :  { %v524_v21 = vmul.f32 %v1055_v20, %v177_v59 }
 0x17f   :  { %v499_v22 = vpop.f32.mrb[12].mxu0  ;;  %v504_v23 = vpop.f32.mrb[12].mxu1 }
 0x180   :  { %v525_v24 = vmul.f32 %v499_v22, %v333_v62  ;;  %v526_v25 = vmul.f32 %v504_v23, %v338_v4  ;;  %v898_v26 = vpop.f32.mrb[13].mxu1  ;;  %v895_v27 = vpop.f32.mrb[13].mxu0 }
 0x182   :  { %v528_v28 = vmax.f32 %v525_v24, 1e-16  ;;  %v529_v29 = vmax.f32 %v526_v25, 1e-16 }
 0x183   :  { %v509_v31 = vpop.f32.mrb[14].mxu1 }
 0x184   :  { %1056 = vrsqrt.f32 %v528_v28  ;;  %v527_v32 = vmul.f32 %v509_v31, %v343_v10  ;;  %v901_v33 = vpop.f32.mrb[15].mxu1 }
 0x185   :  { %1058 = vrsqrt.f32 %v529_v29 }
 0x186   :  { %v530_v34 = vmax.f32 %v527_v32, 1e-16 }
 0x188   :  { %1060 = vrsqrt.f32 %v530_v34 }
 0x18e   :  { %v1057_v40 = vpop.eup %1056 }
 0x18f   :  { %v1059_v42 = vpop.eup %1058  ;;  %v534_v43 = vmul.f32 %v1057_v40, %v1446_v50 }
 0x190   :  { %v535_v44 = vmul.f32 %v1059_v42, %v255_v54 }
 0x191   :  { %v537_v45 = vsub.f32 %v534_v43, %v522_v17 }
 0x192   :  { %v1061_v47 = vpop.eup %1060  ;;  %v538_v48 = vsub.f32 %v535_v44, %v523_v19 }
 0x193   :  { %v536_v49 = vmul.f32 %v1061_v47, %v1448_v58  ;;  %v540_v51 = vadd.f32 2.0, %v537_v45 }
 0x194   :  { %v541_v52 = vadd.f32 2.0, %v538_v48 }
 0x195   :  { %v539_v53 = vsub.f32 %v536_v49, %v524_v21  ;;  %v543_v55 = vmax.f32 %v540_v51, 0.0 }
 0x196   :  { %v544_v50 = vmax.f32 %v541_v52, 0.0 }
 0x197   :  { %v542_v54 = vadd.f32 2.0, %v539_v53  ;;  %v567_v56 = vsel %vm564_vm4, %v543_v55, 0.0 }
 0x198   :  { %v568_v57 = vsel %vm565_vm6, %v544_v50, 0.0 }
 0x199   :  { %v545_v59 = vmax.f32 %v542_v54, 0.0  ;;  %v570_v60 = vadd.f32 %v568_v57, %v567_v56 }
 0x19b   :  { %v569_v61 = vsel %vm566_vm7, %v545_v59, 0.0 }
 0x19c   :  { %v572_v58 = vsel %vm571_vm8, %v569_v61, 0.0 }
 0x19d   :  { %v573_v62 = vadd.f32 %v572_v58, %v570_v60 }
 0x19f   :  { %574 = vadd.xlane.f32.xlu0 %v573_v62 }
 0x22c   :  { %v575_v63 = vpop.xlane.xlu0 %574 }
 0x22d   :  { %v576_v0 = vrot.slane %v575_v63, 4 }
 0x22f   :  { %v577_v2 = vadd.f32 %v576_v0, %v575_v63 }
 0x231   :  { %v578_v1 = vrot.slane %v577_v2, 2 }
 0x233   :  { %v579_v3 = vadd.f32 %v578_v1, %v577_v2 }
 0x235   :  { %v580_v4 = vrot.slane %v579_v3, 1 }
 0x237   :  { %v581_v5 = vadd.f32 %v580_v4, %v579_v3 }
 0x239   :  { %1038 = vpush %v581_v5 }
 0x26a   :  { %s1039_s28 = spop %1038 }
 0x26b   :  { %v583_v6 = vstv %s1039_s28 }
 0x26c   :  { %584 = vst [vmem:[#allocation10] sm:$0xff] %v583_v6 }
 0x26d   :  { %1161 = shalt.err (!%p1158_p8)
}
 0x26e   :  { %s1162_s14 = scalar_lea.hbm %s1471_s4, 128 }
 0x26f   :  { %p1163_p9 = scmp.ne.s32.totalorder %s1471_s4, %s1162_s14  ;;  %p1166_p10 = scmp.lt.u32.totalorder %s1162_s14, %s1471_s4 }
 0x271   :  { %p1168_p11 = pnand %p1166_p10, %p1163_p9 }
 0x273   :  { %1171 = shalt.err (!%p1168_p11)
}
 0x274   :  { %594 = dma.vmem_to_hbm [thread:$0]  %s592_s27, 128, %s1471_s4, [#allocation4]  }
 0x275   :  { %1178 = dma.done.wait [#allocation4], 128  }
 0x276   :  { %1179 = vsyncadd [#allocation4], 4294967168 }
 0x277   :  { %598 = vsyncpa [#allocation3], 1 }
 0x278   :  { %599 = vsyncpa [#allocation6], 1 }
 0x279   :  { %600 = vsyncpa [#allocation9], 1 }
 0x27a   :  { %601 = vsyncpa [#allocation4], 1 }

</bundles_post_ra>
